<compile_context>
chip_gen: v7x
topology: tpu7x:2x2x1
jax: 0.10.0
libtpu: 0.0.40
codegen_flags: <defaults>
</compile_context>

<pallas_src>
import jax
import jax.numpy as jnp
from jax.experimental import pallas as pl
from jax.experimental.pallas import tpu as pltpu

EPS = 1e-5
LANE = 128
SUBLANE = 8
DEFAULT_TILE_M = 512            # 512-row tiles ~85% of HBM roofline, VMEM-safe on v7x
VMEM_LIMIT = 48 * 1024 * 1024   # explicit scoped-VMEM budget (< v7x 64 MiB physical)
STAT_ROWS = 8                   # sublane-aligned stats block: row0=sum, row1=sum-of-squares


# ---------------------------------------------------------------------------
# small helpers
# ---------------------------------------------------------------------------
def _round_up(x, m):
    return (x + m - 1) // m * m


def _cpad(c):
    return _round_up(c, LANE)


def _pad_cols(x, cols):
    return x if x.shape[1] == cols else jnp.pad(x, ((0, 0), (0, cols - x.shape[1])))


def _pad_rows(x, rows):
    return x if x.shape[0] == rows else jnp.pad(x, ((0, rows - x.shape[0]), (0, 0)))


def _row_tile(m_true, tile_m):
    tm = min(tile_m, _round_up(m_true, SUBLANE))
    mpad = _round_up(m_true, tm)
    return tm, mpad


# ---------------------------------------------------------------------------
# Pallas kernels (no program_id / pl.when anywhere — see header)
# ---------------------------------------------------------------------------
def _sums(v):
    """Per-channel [sum, sum-of-squares] of an f32 tile in one pass -> (1, 8, C)."""
    s0 = jnp.sum(v, axis=0, keepdims=True)
    s1 = jnp.sum(v * v, axis=0, keepdims=True)
    pad = jnp.zeros((STAT_ROWS - 2, v.shape[1]), jnp.float32)
    return jnp.concatenate([s0, s1, pad], axis=0)[None]


def _matmul_stats_kernel(x_ref, w_ref, y_ref, st_ref):
    """y = x @ w (bf16 operands, f32 accumulation, full-K resident weight),
    plus per-tile BN partial stats.  Padded x rows are exactly zero, so the
    unmasked sums are already correct."""
    acc = jnp.dot(x_ref[...], w_ref[...], preferred_element_type=jnp.float32)
    y_ref[...] = acc.astype(y_ref.dtype)
    st_ref[...] = _sums(acc)


def _affine_act_kernel(x_ref, s_ref, t_ref, a_ref, y_ref, st_ref):
    """BN affine (scale/shift from precomputed batch stats) + PReLU (alpha=1 =>
    identity), plus per-tile stats of the result."""
    v = x_ref[...].astype(jnp.float32) * s_ref[...] + t_ref[...]
    v = jnp.where(v >= 0.0, v, a_ref[...] * v)
    y_ref[...] = v.astype(y_ref.dtype)
    st_ref[...] = _sums(v)


def _affine_add_kernel(y_ref, s1_ref, t1_ref, r_ref, s2_ref, t2_ref, o_ref, st_ref):
    """out = bn3_affine(conv2_out) + identity_affine(identity); also emits the
    stats of the block output (== next block's bn1 batch statistics)."""
    v = (y_ref[...].astype(jnp.float32) * s1_ref[...] + t1_ref[...]
         + r_ref[...].astype(jnp.float32) * s2_ref[...] + t2_ref[...])
    o_ref[...] = v.astype(o_ref.dtype)
    st_ref[...] = _sums(v)


# ---------------------------------------------------------------------------
# pallas_call wrappers (row-tiled, software-pipelined)
# ---------------------------------------------------------------------------
def conv_matmul(x_slab, w, m_true, *, tile_m=DEFAULT_TILE_M):
    """Row-tiled matmul with a VMEM-resident full-K weight.
    Returns (y[:m_true] bf16, per-channel [sum, sumsq] f32 of shape (2, C))."""
    K, n_p = w.shape
    tm, mpad = _row_tile(m_true, tile_m)
    gm = mpad // tm
    x_p = _pad_rows(x_slab, mpad)

    y, st = pl.pallas_call(
        _matmul_stats_kernel,
        grid=(gm,),
        in_specs=[pl.BlockSpec((tm, K), lambda i: (i, 0)),
                  pl.BlockSpec((K, n_p), lambda i: (0, 0))],     # weight fetched once
        out_specs=(pl.BlockSpec((tm, n_p), lambda i: (i, 0)),
                   pl.BlockSpec((1, STAT_ROWS, n_p), lambda i: (i, 0, 0))),
        out_shape=(jax.ShapeDtypeStruct((mpad, n_p), jnp.bfloat16),
                   jax.ShapeDtypeStruct((gm, STAT_ROWS, n_p), jnp.float32)),
        compiler_params=pltpu.CompilerParams(
            dimension_semantics=("parallel",),
            vmem_limit_bytes=VMEM_LIMIT),
    )(x_p, w)
    return y[:m_true], jnp.sum(st, axis=0)[:2]


def affine_act(x_slab, scale, shift, alpha, m_true, *, tile_m=DEFAULT_TILE_M):
    c = x_slab.shape[1]
    tm, mpad = _row_tile(m_true, tile_m)
    gm = mpad // tm
    x_p = _pad_rows(x_slab, mpad)
    vec = pl.BlockSpec((1, c), lambda i: (0, 0))

    y, st = pl.pallas_call(
        _affine_act_kernel,
        grid=(gm,),
        in_specs=[pl.BlockSpec((tm, c), lambda i: (i, 0)), vec, vec, vec],
        out_specs=(pl.BlockSpec((tm, c), lambda i: (i, 0)),
                   pl.BlockSpec((1, STAT_ROWS, c), lambda i: (i, 0, 0))),
        out_shape=(jax.ShapeDtypeStruct((mpad, c), jnp.bfloat16),
                   jax.ShapeDtypeStruct((gm, STAT_ROWS, c), jnp.float32)),
        compiler_params=pltpu.CompilerParams(
            dimension_semantics=("parallel",),
            vmem_limit_bytes=VMEM_LIMIT),
    )(x_p, scale, shift, alpha)

    sums = jnp.sum(st, axis=0)[:2]
    npad = mpad - m_true
    if npad:   # padded input rows (zeros) become prelu(shift); subtract analytically
        pad = jnp.where(shift >= 0.0, shift, alpha * shift)
        sums = sums - npad * jnp.concatenate([pad, pad * pad], axis=0)
    return y[:m_true], sums


def affine_add(y_slab, s1, t1, r_slab, s2, t2, m_true, *, tile_m=DEFAULT_TILE_M):
    c = y_slab.shape[1]
    tm, mpad = _row_tile(m_true, tile_m)
    gm = mpad // tm
    y_p = _pad_rows(y_slab, mpad)
    r_p = _pad_rows(r_slab, mpad)
    vec = pl.BlockSpec((1, c), lambda i: (0, 0))

    o, st = pl.pallas_call(
        _affine_add_kernel,
        grid=(gm,),
        in_specs=[pl.BlockSpec((tm, c), lambda i: (i, 0)), vec, vec,
                  pl.BlockSpec((tm, c), lambda i: (i, 0)), vec, vec],
        out_specs=(pl.BlockSpec((tm, c), lambda i: (i, 0)),
                   pl.BlockSpec((1, STAT_ROWS, c), lambda i: (i, 0, 0))),
        out_shape=(jax.ShapeDtypeStruct((mpad, c), jnp.bfloat16),
                   jax.ShapeDtypeStruct((gm, STAT_ROWS, c), jnp.float32)),
        compiler_params=pltpu.CompilerParams(
            dimension_semantics=("parallel",),
            vmem_limit_bytes=VMEM_LIMIT),
    )(y_p, s1, t1, r_p, s2, t2)

    sums = jnp.sum(st, axis=0)[:2]
    npad = mpad - m_true
    if npad:   # padded rows (zeros) become t1 + t2; subtract analytically
        pad = t1 + t2
        sums = sums - npad * jnp.concatenate([pad, pad * pad], axis=0)
    return o[:m_true], sums


# ---------------------------------------------------------------------------
# tiny plain-JAX glue
# ---------------------------------------------------------------------------
def bn_affine(sums, count, gamma, beta):
    """Train-mode BatchNorm2d: biased batch stats -> per-channel (scale, shift)."""
    mean = sums[0:1] / count
    var = jnp.maximum(sums[1:2] / count - mean * mean, 0.0)
    scale = gamma * jax.lax.rsqrt(var + EPS)
    shift = beta - mean * scale
    return scale, shift


def im2col3x3(x, stride):
    # TODO(synk): replace this HBM-materialized im2col (9x activation blow-up)
    # with an in-kernel 9-tap shifted-window conv; mitigated here by bf16 patches.
    N, H, W, C = x.shape
    Ho = (H + 2 - 3) // stride + 1
    Wo = (W + 2 - 3) // stride + 1
    xp = jnp.pad(x, ((0, 0), (1, 1), (1, 1), (0, 0)))
    cols = []
    for ky in range(3):
        for kx in range(3):
            cols.append(xp[:, ky:ky + 1 + stride * (Ho - 1):stride,
                              kx:kx + 1 + stride * (Wo - 1):stride, :])
    p = jnp.concatenate(cols, axis=-1)
    return p.reshape(N * Ho * Wo, 9 * C), (N, Ho, Wo)


# ---------------------------------------------------------------------------
# parameter initialization (mirrors IResNet.__init__: conv ~ N(0,0.1),
# BN gamma=1 beta=0, PReLU alpha=0.25).  Weights stored matmul-ready in bf16,
# channel dims zero-padded to multiples of 128.
# ---------------------------------------------------------------------------
def init_params(layers, key):
    keys = iter(jax.random.split(key, 256))

    def w3x3(cin, cin_pad, cout, cout_pad):
        w = jax.random.normal(next(keys), (3, 3, cin, cout), jnp.float32) * 0.1
        w = jnp.pad(w, ((0, 0), (0, 0), (0, cin_pad - cin), (0, cout_pad - cout)))
        return w.reshape(9 * cin_pad, cout_pad).astype(jnp.bfloat16)

    def w1x1(cin, cin_pad, cout, cout_pad):
        w = jax.random.normal(next(keys), (cin, cout), jnp.float32) * 0.1
        w = jnp.pad(w, ((0, cin_pad - cin), (0, cout_pad - cout)))
        return w.astype(jnp.bfloat16)

    def bn(c, cpad):
        return {"g": _pad_cols(jnp.ones((1, c), jnp.float32), cpad),
                "b": jnp.zeros((1, cpad), jnp.float32)}

    def prelu(c, cpad):
        return _pad_cols(jnp.full((1, c), 0.25, jnp.float32), cpad)

    c64 = _cpad(64)
    params = {"stem": {"conv": w3x3(3, 3, 64, c64),      # K = 27 (tiny, full-dim block)
                       "bn": bn(64, c64),
                       "alpha": prelu(64, c64)},
              "layers": []}

    inplanes = 64
    for planes, blocks in zip([64, 128, 256, 512], layers):
        blks = []
        for b in range(blocks):
            stride = 2 if b == 0 else 1
            cin_p, cout_p = _cpad(inplanes), _cpad(planes)
            blk = {"stride": stride,
                   "planes": planes,
                   "cin_pad": cin_p,
                   "cout_pad": cout_p,
                   "bn1": bn(inplanes, cin_p),
                   "conv1": w3x3(inplanes, cin_p, planes, cout_p),
                   "bn2": bn(planes, cout_p),
                   "alpha": prelu(planes, cout_p),
                   "conv2": w3x3(planes, cout_p, planes, cout_p),
                   "bn3": bn(planes, cout_p)}
            if stride != 1 or inplanes != planes:
                blk["ds_conv"] = w1x1(inplanes, cin_p, planes, cout_p)
                blk["ds_bn"] = bn(planes, cout_p)
            blks.append(blk)
            inplanes = planes
        params["layers"].append(blks)
    return params


# ---------------------------------------------------------------------------
# forward pass
# ---------------------------------------------------------------------------
def ibasic_block(x_slab, x_sums, shape, blk):
    N, H, W = shape
    cin_p, cout_p = blk["cin_pad"], blk["cout_pad"]
    stride = blk["stride"]
    m_in = N * H * W

    # bn1(x): batch stats were emitted (fused) by the producer of x; apply affine.
    # NOTE: the bn1 shift cannot be folded into conv1 weights because conv1
    # zero-pads *after* bn1 (border pixels would see 'shift' instead of 0).
    s1, t1 = bn_affine(x_sums, m_in, blk["bn1"]["g"], blk["bn1"]["b"])
    no_act = jnp.ones((1, cin_p), jnp.float32)
    xh, _ = affine_act(x_slab, s1, t1, no_act, m_in)

    # conv1 (3x3, stride 1): full-K resident weight, emits bn2 stats.
    p1, _ = im2col3x3(xh.reshape(N, H, W, cin_p), 1)
    y1, y1_sums = conv_matmul(p1, blk["conv1"], m_in)

    # bn2 -> PReLU (affine + activation fused in one tiled pass).
    s2, t2 = bn_affine(y1_sums, m_in, blk["bn2"]["g"], blk["bn2"]["b"])
    z1, _ = affine_act(y1, s2, t2, blk["alpha"], m_in)

    # conv2 (3x3, stride): emits bn3 stats.
    p2, (_, Ho, Wo) = im2col3x3(z1.reshape(N, H, W, cout_p), stride)
    m_out = N * Ho * Wo
    y2, y2_sums = conv_matmul(p2, blk["conv2"], m_out)
    s3, t3 = bn_affine(y2_sums, m_out, blk["bn3"]["g"], blk["bn3"]["b"])

    # identity path; bn3-affine + (downsample-BN-affine) + residual add fused.
    if "ds_conv" in blk:
        # TODO(synk): express this strided subsample with a strided BlockSpec /
        # pl.ds feeding the 1x1 conv kernel directly instead of an XLA slice.
        xs = x_slab.reshape(N, H, W, cin_p)[:, ::stride, ::stride, :]
        xs = xs.reshape(m_out, cin_p)
        yd, yd_sums = conv_matmul(xs, blk["ds_conv"], m_out)
        sd, td = bn_affine(yd_sums, m_out, blk["ds_bn"]["g"], blk["ds_bn"]["b"])
        out, out_sums = affine_add(y2, s3, t3, yd, sd, td, m_out)
    else:
        one = jnp.ones((1, cout_p), jnp.float32)
        zero = jnp.zeros((1, cout_p), jnp.float32)
        out, out_sums = affine_add(y2, s3, t3, x_slab, one, zero, m_out)

    return out, out_sums, (N, Ho, Wo)


def iresnet_forward(params, x_nchw, return_features=True):
    # NCHW -> NHWC, bf16 activations (f32 accumulation inside kernels).
    x = jnp.transpose(x_nchw, (0, 2, 3, 1)).astype(jnp.bfloat16)

    # stem: conv1 -> bn1 -> prelu
    patches, (N, Ho, Wo) = im2col3x3(x, 1)
    m = N * Ho * Wo
    st = params["stem"]
    y, y_sums = conv_matmul(patches, st["conv"], m)
    s, t = bn_affine(y_sums, m, st["bn"]["g"], st["bn"]["b"])
    x_slab, x_sums = affine_act(y, s, t, st["alpha"], m)
    shape = (N, Ho, Wo)

    feats = []
    for blks in params["layers"]:
        for blk in blks:
            x_slab, x_sums, shape = ibasic_block(x_slab, x_sums, shape, blk)
        feats.append((x_slab, shape, blk["planes"]))

    def to_nchw(slab, shp, c_true):
        n, h, w = shp
        t4 = slab.reshape(n, h, w, slab.shape[-1])[..., :c_true]
        return jnp.transpose(t4, (0, 3, 1, 2)).astype(jnp.float32)

    outs = [to_nchw(*f) for f in feats]
    if return_features:
        outs.append(to_nchw(*feats[-1]))
        return outs
    return outs[-1]


# ---------------------------------------------------------------------------
if __name__ == "__main__":
    key = jax.random.PRNGKey(0)
    pkey, xkey = jax.random.split(key)

    layers = [2, 1, 1, 1]                  # small synthetic IResNet
    params = init_params(layers, pkey)

    x = jax.random.normal(xkey, (2, 3, 16, 16), jnp.float32)   # NCHW input

    outs = iresnet_forward(params, x, return_features=True)
    outs = jax.block_until_ready(outs)

    expected = [(2, 64, 8, 8), (2, 128, 4, 4), (2, 256, 2, 2),
                (2, 512, 1, 1), (2, 512, 1, 1)]
    assert [tuple(o.shape) for o in outs] == expected
    assert all(bool(jnp.all(jnp.isfinite(o))) for o in outs)
    print("KERNEL_OK")
</pallas_src>

<mosaic_0001>
module attributes {stable_mosaic.version = 11 : i64} {
  func.func @_matmul_stats_kernel(%arg0: i32, %arg1: memref<512x27xbf16, #tpu.memory_space<vmem>>, %arg2: memref<27x128xbf16, #tpu.memory_space<vmem>>, %arg3: memref<512x128xbf16, #tpu.memory_space<vmem>>, %arg4: memref<1x8x128xf32, #tpu.memory_space<vmem>>) attributes {dimension_semantics = [#tpu.dimension_semantics<parallel>], iteration_bounds = array<i64: 1>, scalar_prefetch = 0 : i64, scratch_operands = 0 : i64, tpu.core_type = #tpu.core_type<tc>, window_params = [{transform_indices = @transform_0, window_bounds = array<i64: 512, 27>}, {pipeline_mode = #tpu.pipeline_mode<synchronous>, transform_indices = @transform_1, window_bounds = array<i64: 27, 128>}, {transform_indices = @transform_2, window_bounds = array<i64: 512, 128>}, {transform_indices = @transform_3, window_bounds = array<i64: 1, 8, 128>}]} {
    %c0 = arith.constant 0 : index
    %c0_0 = arith.constant 0 : index
    %0 = vector.load %arg1[%c0, %c0_0] : memref<512x27xbf16, #tpu.memory_space<vmem>>, vector<512x27xbf16>
    %c0_1 = arith.constant 0 : index
    %c0_2 = arith.constant 0 : index
    %1 = vector.load %arg2[%c0_1, %c0_2] : memref<27x128xbf16, #tpu.memory_space<vmem>>, vector<27x128xbf16>
    %cst = arith.constant dense<0.000000e+00> : vector<512x128xf32>
    %2 = tpu.matmul %0, %1, %cst {dimension_numbers = #tpu.dot_dimension_numbers<[1], [0], [0], [1], [0, 0, 1, 1], [], []>} : vector<512x27xbf16>, vector<27x128xbf16>, vector<512x128xf32> -> vector<512x128xf32>
    %3 = arith.truncf %2 : vector<512x128xf32> to vector<512x128xbf16>
    %c0_3 = arith.constant 0 : index
    %c0_4 = arith.constant 0 : index
    %4 = vector.load %arg3[%c0_3, %c0_4] : memref<512x128xbf16, #tpu.memory_space<vmem>>, vector<512x128xbf16>
    tpu.vector_store %arg3[%c0_3, %c0_4], %3 {strides = array<i32>} : memref<512x128xbf16, #tpu.memory_space<vmem>>, vector<512x128xbf16>,
    %cst_5 = arith.constant dense<0.000000e+00> : vector<128xf32>
    %5 = vector.multi_reduction <add>, %2, %cst_5 [0] : vector<512x128xf32> to vector<128xf32>
    %6 = vector.shape_cast %5 : vector<128xf32> to vector<1x128xf32>
    %7 = arith.mulf %2, %2 : vector<512x128xf32>
    %cst_6 = arith.constant dense<0.000000e+00> : vector<128xf32>
    %8 = vector.multi_reduction <add>, %7, %cst_6 [0] : vector<512x128xf32> to vector<128xf32>
    %9 = vector.shape_cast %8 : vector<128xf32> to vector<1x128xf32>
    %cst_7 = arith.constant 0.000000e+00 : f32
    %10 = vector.broadcast %cst_7 : f32 to vector<6x128xf32>
    %11 = tpu.concatenate %6, %9, %10 in 0 : vector<1x128xf32>, vector<1x128xf32>, vector<6x128xf32> -> vector<8x128xf32>
    %12 = vector.shape_cast %11 : vector<8x128xf32> to vector<1x8x128xf32>
    %c0_8 = arith.constant 0 : index
    %c0_9 = arith.constant 0 : index
    %c0_10 = arith.constant 0 : index
    %13 = vector.load %arg4[%c0_8, %c0_9, %c0_10] : memref<1x8x128xf32, #tpu.memory_space<vmem>>, vector<1x8x128xf32>
    tpu.vector_store %arg4[%c0_8, %c0_9, %c0_10], %12 {strides = array<i32>} : memref<1x8x128xf32, #tpu.memory_space<vmem>>, vector<1x8x128xf32>,
    return
  }
  func.func @transform_0(%arg0: i32) -> (i32, i32) {
    %c0_i32 = arith.constant 0 : i32
    %c0_i32_0 = arith.constant 0 : i32
    return %arg0, %c0_i32 : i32, i32
  }
  func.func @transform_1(%arg0: i32) -> (i32, i32) {
    %c0_i32 = arith.constant 0 : i32
    %c0_i32_0 = arith.constant 0 : i32
    %c0_i32_1 = arith.constant 0 : i32
    return %c0_i32, %c0_i32_0 : i32, i32
  }
  func.func @transform_2(%arg0: i32) -> (i32, i32) {
    %c0_i32 = arith.constant 0 : i32
    %c0_i32_0 = arith.constant 0 : i32
    return %arg0, %c0_i32 : i32, i32
  }
  func.func @transform_3(%arg0: i32) -> (i32, i32, i32) {
    %c0_i32 = arith.constant 0 : i32
    %c0_i32_0 = arith.constant 0 : i32
    %c0_i32_1 = arith.constant 0 : i32
    return %arg0, %c0_i32, %c0_i32_0 : i32, i32, i32
  }
}

</mosaic_0001>

<bundles_post_ra>
// kernel: tpu_custom_call.1
= control target key start
LH: loop header
LB: loop body
LE: loop exit
PB: predicated region body
PF: predicated region fallthrough
CT: control target
= control target key end

     0   :  { %9 = vsyncpa [#allocation3], 0  ;;  %vm352_vm0 = vcmask 1044480   ;;  %vm353_vm1 = vcmask 1045504   ;;  %v1783_v2 = vmov 65535   ;;  %vm255_vm2 = vcmask 220160   ;;  %s2158_s0 = inlined_call_operand.vmem [shape: bf16[512,27], index: 0, kind: input, shape index: {}]   ;;  %s2159_s1 = inlined_call_operand.vmem [shape: bf16[27,128], index: 1, kind: input, shape index: {}]   ;;  %s2160_s2 = inlined_call_operand.hbm [shape: bf16[512,128], index: 2, kind: output, shape index: {0}]   ;;  %s2161_s3 = inlined_call_operand.hbm [shape: f32[1,8,128], index: 3, kind: output, shape index: {1}]  }
   0x1   :  { %v1701_v0 = vld [vmem:[%s2159_s1] sm:$0xff]   ;;  %v1702_v1 = vld [vmem:[%s2159_s1 + $0x8] sm:$0x3f]   ;;  %v354_v3 = vsel %vm352_vm0, 4294967295, %v1783_v2  ;;  %v1705_v8 = vld [vmem:[%s2158_s0 + $0x10] sm:$0xff]  }
   0x2   :  { %1624 = vmatprep.subr.bf16.mxu0 %v1701_v0  ;;  %1692 = vmatprep.subr.bf16.mxu1 %v1701_v0  ;;  %v1703_v4 = vld [vmem:[%s2158_s0] sm:$0xff]   ;;  %v355_v5 = vsel %vm353_vm1, %v354_v3, 0  ;;  %v1704_v7 = vld [vmem:[%s2158_s0 + $0x8] sm:$0xff]   ;;  %v1706_v9 = vld [vmem:[%s2158_s0 + $0x18] sm:$0xff]  }
   0x3   :  { %1625 = vmatpush3.bf16.msra.mxu0 %v1701_v0  ;;  %1694 = vmatpush3.bf16.msra.mxu1 %v1701_v0  ;;  %v357_v6 = vand.u32 %v1702_v1, %v355_v5  ;;  %v1707_v10 = vld [vmem:[%s2158_s0 + $0x20] sm:$0xff]   ;;  %v1720_v12 = vld [vmem:[%s2158_s0 + $0x88] sm:$0xff]   ;;  %v1721_v13 = vld [vmem:[%s2158_s0 + $0x90] sm:$0xff]  }
   0x4   :  { %1628 = vmatprep.mubr.msk.bf16.mxu0 %vm255_vm2, %v1703_v4  ;;  %v1719_v11 = vld [vmem:[%s2158_s0 + $0x80] sm:$0xff]   ;;  %v1708_v14 = vld [vmem:[%s2158_s0 + $0x28] sm:$0xff]   ;;  %v1709_v15 = vld [vmem:[%s2158_s0 + $0x30] sm:$0xff]  }
   0x5   :  { %1626 = vmatprep.subr.bf16.mxu0 %v357_v6  ;;  %1693 = vmatprep.subr.bf16.mxu1 %v357_v6  ;;  %v1722_v16 = vld [vmem:[%s2158_s0 + $0x98] sm:$0xff]   ;;  %v1723_v17 = vld [vmem:[%s2158_s0 + $0xa0] sm:$0xff]   ;;  %v1724_v20 = vld [vmem:[%s2158_s0 + $0xa8] sm:$0xff]  }
   0x6   :  { %1660 = vmatprep.mubr.msk.bf16.mxu1 %vm255_vm2, %v1719_v11  ;;  %v1710_v18 = vld [vmem:[%s2158_s0 + $0x38] sm:$0xff]   ;;  %v1711_v19 = vld [vmem:[%s2158_s0 + $0x40] sm:$0xff]  }
   0x7   :  { %1627 = vmatpush3.bf16.msra.mxu0 %v357_v6  ;;  %1695 = vmatpush3.bf16.msra.mxu1 %v357_v6 }
   0xa   :  { %1629 = vmatmul.mubr.msk.bf16.vlgmr.msra.gmra.mrb[0].mxu0 %vm255_vm2, %v1704_v7  ;;  %1661 = vmatmul.mubr.msk.bf16.vlgmr.msra.gmra.mrb[0].mxu1 %vm255_vm2, %v1720_v12 }
   0xb   :  { %1632 = vmatprep.mubr.msk.bf16.mxu0 %vm255_vm2, %v1705_v8  ;;  %1664 = vmatprep.mubr.msk.bf16.mxu1 %vm255_vm2, %v1721_v13 }
  0x12   :  { %1633 = vmatmul.mubr.msk.bf16.gmra.mrb[4].mxu0 %vm255_vm2, %v1706_v9  ;;  %1665 = vmatmul.mubr.msk.bf16.gmra.mrb[4].mxu1 %vm255_vm2, %v1722_v16 }
  0x13   :  { %1636 = vmatprep.mubr.msk.bf16.mxu0 %vm255_vm2, %v1707_v10  ;;  %1668 = vmatprep.mubr.msk.bf16.mxu1 %vm255_vm2, %v1723_v17 }
  0x1a   :  { %1637 = vmatmul.mubr.msk.bf16.gmra.mrb[8].mxu0 %vm255_vm2, %v1708_v14 }
  0x1b   :  { %1640 = vmatprep.mubr.msk.bf16.mxu0 %vm255_vm2, %v1709_v15 }
  0x1c   :  { %10 = vsyncpa [#allocation5], 0  ;;  %v1725_v21 = vld [vmem:[%s2158_s0 + $0xb0] sm:$0xff]   ;;  %1669 = vmatmul.mubr.msk.bf16.gmra.mrb[8].mxu1 %vm255_vm2, %v1724_v20  ;;  %v1712_v22 = vld [vmem:[%s2158_s0 + $0x48] sm:$0xff]  }
  0x1d   :  { %1672 = vmatprep.mubr.msk.bf16.mxu1 %vm255_vm2, %v1725_v21  ;;  %v1713_v23 = vld [vmem:[%s2158_s0 + $0x50] sm:$0xff]   ;;  %v1726_v24 = vld [vmem:[%s2158_s0 + $0xb8] sm:$0xff]   ;;  %v1727_v25 = vld [vmem:[%s2158_s0 + $0xc0] sm:$0xff]  }
  0x1e   :  { %v1714_v26 = vld [vmem:[%s2158_s0 + $0x58] sm:$0xff]   ;;  %v1715_v27 = vld [vmem:[%s2158_s0 + $0x60] sm:$0xff]   ;;  %v1728_v28 = vld [vmem:[%s2158_s0 + $0xc8] sm:$0xff]  }
  0x1f   :  { %v1729_v29 = vld [vmem:[%s2158_s0 + $0xd0] sm:$0xff]   ;;  %v1716_v30 = vld [vmem:[%s2158_s0 + $0x68] sm:$0xff]   ;;  %v1730_v32 = vld [vmem:[%s2158_s0 + $0xd8] sm:$0xff]  }
  0x20   :  { %v1717_v31 = vld [vmem:[%s2158_s0 + $0x70] sm:$0xff]   ;;  %v1731_v33 = vld [vmem:[%s2158_s0 + $0xe0] sm:$0xff]   ;;  %v1718_v34 = vld [vmem:[%s2158_s0 + $0x78] sm:$0xff]  }
  0x21   :  { %v1732_v35 = vld [vmem:[%s2158_s0 + $0xe8] sm:$0xff]   ;;  %v1733_v36 = vld [vmem:[%s2158_s0 + $0xf0] sm:$0xff]   ;;  %v1734_v37 = vld [vmem:[%s2158_s0 + $0xf8] sm:$0xff]   ;;  %s1784_s0 = smov [#allocation2]  }
  0x22   :  { %1641 = vmatmul.mubr.msk.bf16.gmra.mrb[12].mxu0 %vm255_vm2, %v1710_v18  ;;  %s1180_s23 = sshll.u32 %s1784_s0, 4  ;;  %s1181_s23 = int_to_ptr.vmem [resolvable:$true] %s1180_s23 }
  0x23   :  { %1644 = vmatprep.mubr.msk.bf16.mxu0 %vm255_vm2, %v1711_v19  ;;  %s1735_s24 = scalar_lea.vmem %s1181_s23, 4096  ;;  %p1740_p1 = scmp.lt.s32.totalorder %s1181_s23, %s1181_s23 }
  0x24   :  { %1673 = vmatmul.mubr.msk.bf16.gmra.mrb[12].mxu1 %vm255_vm2, %v1726_v24  ;;  %p1736_p0 = scmp.ne.s32.totalorder %s1181_s23, %s1735_s24  ;;  %p1741_p2 = scmp.lt.s32.totalorder %s1735_s24, %s1735_s24 }
  0x25   :  { %1676 = vmatprep.mubr.msk.bf16.mxu1 %vm255_vm2, %v1727_v25 }
  0x26   :  { %p1742_p3 = por %p1741_p2, %p1740_p1 }
  0x28   :  { %p1743_p4 = pnand %p1742_p3, %p1736_p0 }
  0x2a   :  { %1645 = vmatmul.mubr.msk.bf16.gmra.mrb[16].mxu0 %vm255_vm2, %v1712_v22 }
  0x2b   :  { %1648 = vmatprep.mubr.msk.bf16.mxu0 %vm255_vm2, %v1713_v23 }
  0x2c   :  { %1677 = vmatmul.mubr.msk.bf16.gmra.mrb[16].mxu1 %vm255_vm2, %v1728_v28 }
  0x2d   :  { %1680 = vmatprep.mubr.msk.bf16.mxu1 %vm255_vm2, %v1729_v29 }
  0x32   :  { %1649 = vmatmul.mubr.msk.bf16.gmra.mrb[20].mxu0 %vm255_vm2, %v1714_v26 }
  0x33   :  { %1652 = vmatprep.mubr.msk.bf16.mxu0 %vm255_vm2, %v1715_v27 }
  0x34   :  { %1681 = vmatmul.mubr.msk.bf16.gmra.mrb[20].mxu1 %vm255_vm2, %v1730_v32 }
  0x35   :  { %1684 = vmatprep.mubr.msk.bf16.mxu1 %vm255_vm2, %v1731_v33 }
  0x3a   :  { %1653 = vmatmul.mubr.msk.bf16.gmra.mrb[24].mxu0 %vm255_vm2, %v1716_v30 }
  0x3b   :  { %1656 = vmatprep.mubr.msk.bf16.mxu0 %vm255_vm2, %v1717_v31 }
  0x3c   :  { %1685 = vmatmul.mubr.msk.bf16.gmra.mrb[24].mxu1 %vm255_vm2, %v1732_v35 }
  0x3d   :  { %1688 = vmatprep.mubr.msk.bf16.mxu1 %vm255_vm2, %v1733_v36 }
  0x42   :  { %1657 = vmatmul.mubr.msk.bf16.gmra.mrb[28].mxu0 %vm255_vm2, %v1718_v34 }
  0x44   :  { %1689 = vmatmul.mubr.msk.bf16.gmra.mrb[28].mxu1 %vm255_vm2, %v1734_v37 }
  0xdd   :  { %v1630_v38 = vpop.f32.mrb[0].mxu0  ;;  %v1942_v61 = vpop.f32.mrb[0].mxu1 }
  0xde   :  { %v393_v39 = vpop.f32.mrb[1].mxu0  ;;  %v1039_v47 = vmul.f32 %v1630_v38, %v1630_v38  ;;  %v1944_v2 = vpop.f32.mrb[1].mxu1 }
  0xdf   :  { %v1631_v40 = vpop.f32.mrb[2].mxu0  ;;  %v1037_v43 = vmul.f32 %v393_v39, %v393_v39  ;;  %v1946_v3 = vpop.f32.mrb[2].mxu1 }
  0xe0   :  { %v1407_v41 = vpack.c.bf16 %v1631_v40, %v1630_v38  ;;  %v396_v42 = vpop.f32.mrb[3].mxu0  ;;  %v1040_v50 = vmul.f32 %v1631_v40, %v1631_v40  ;;  %v1487_v7 = vpack.c.bf16 %v1946_v3, %v1942_v61  ;;  %v1950_v8 = vpop.f32.mrb[3].mxu1 }
  0xe1   :  { %v1402_v44 = vpack.c.bf16 %v396_v42, %v393_v39  ;;  %v968_v45 = vadd.f32 %v396_v42, %v393_v39  ;;  %v1038_v46 = vmul.f32 %v396_v42, %v396_v42  ;;  %v1482_v9 = vpack.c.bf16 %v1950_v8, %v1944_v2 }
  0xe2   :  { %1559 = vst [vmem:[#allocation2 + $0x8] sm:$0xff] %v1407_v41   ;;  %1575 = vst [vmem:[#allocation2 + $0x88] sm:$0xff] %v1487_v7  }
  0xe3   :  { %1403 = vst [vmem:[#allocation2] sm:$0xff] %v1402_v44   ;;  %v969_v48 = vadd.f32 %v1630_v38, %v968_v45  ;;  %v1101_v49 = vadd.f32 %v1038_v46, %v1037_v43  ;;  %1574 = vst [vmem:[#allocation2 + $0x80] sm:$0xff] %v1482_v9  }
  0xe5   :  { %v1102_v51 = vadd.f32 %v1101_v49, %v1039_v47  ;;  %v1634_v52 = vpop.f32.mrb[4].mxu0  ;;  %v970_v53 = vadd.f32 %v1631_v40, %v969_v48  ;;  %v1954_v21 = vpop.f32.mrb[4].mxu1 }
  0xe6   :  { %v409_v54 = vpop.f32.mrb[5].mxu0  ;;  %v1043_v4 = vmul.f32 %v1634_v52, %v1634_v52  ;;  %v1956_v26 = vpop.f32.mrb[5].mxu1 }
  0xe7   :  { %v971_v55 = vadd.f32 %v970_v53, %v409_v54  ;;  %v1041_v56 = vmul.f32 %v409_v54, %v409_v54  ;;  %v1103_v57 = vadd.f32 %v1102_v51, %v1040_v50  ;;  %v1635_v58 = vpop.f32.mrb[6].mxu0  ;;  %v1958_v27 = vpop.f32.mrb[6].mxu1 }
  0xe8   :  { %v1417_v59 = vpack.c.bf16 %v1635_v58, %v1634_v52  ;;  %v412_v60 = vpop.f32.mrb[7].mxu0  ;;  %v1044_v10 = vmul.f32 %v1635_v58, %v1635_v58  ;;  %v1497_v31 = vpack.c.bf16 %v1958_v27, %v1954_v21  ;;  %v1962_v32 = vpop.f32.mrb[7].mxu1 }
  0xe9   :  { %v1104_v62 = vadd.f32 %v1103_v57, %v1041_v56  ;;  %v1412_v63 = vpack.c.bf16 %v412_v60, %v409_v54  ;;  %v972_v0 = vadd.f32 %v971_v55, %v412_v60  ;;  %v1042_v1 = vmul.f32 %v412_v60, %v412_v60 }
  0xea   :  { %1561 = vst [vmem:[#allocation2 + $0x18] sm:$0xff] %v1417_v59   ;;  %v1492_v33 = vpack.c.bf16 %v1962_v32, %v1956_v26  ;;  %1577 = vst [vmem:[#allocation2 + $0x98] sm:$0xff] %v1497_v31  }
  0xeb   :  { %1560 = vst [vmem:[#allocation2 + $0x10] sm:$0xff] %v1412_v63   ;;  %v973_v5 = vadd.f32 %v1634_v52, %v972_v0  ;;  %v1105_v6 = vadd.f32 %v1104_v62, %v1042_v1 }
  0xec   :  { %1576 = vst [vmem:[#allocation2 + $0x90] sm:$0xff] %v1492_v33  }
  0xed   :  { %v1106_v11 = vadd.f32 %v1105_v6, %v1043_v4  ;;  %v1638_v12 = vpop.f32.mrb[8].mxu0  ;;  %v974_v13 = vadd.f32 %v1635_v58, %v973_v5 }
  0xee   :  { %v425_v14 = vpop.f32.mrb[9].mxu0  ;;  %v1047_v28 = vmul.f32 %v1638_v12, %v1638_v12 }
  0xef   :  { %v975_v15 = vadd.f32 %v974_v13, %v425_v14  ;;  %v1045_v16 = vmul.f32 %v425_v14, %v425_v14  ;;  %v1107_v17 = vadd.f32 %v1106_v11, %v1044_v10  ;;  %v1639_v18 = vpop.f32.mrb[10].mxu0  ;;  %v1966_v45 = vpop.f32.mrb[8].mxu1 }
  0xf0   :  { %v1427_v19 = vpack.c.bf16 %v1639_v18, %v1638_v12  ;;  %v428_v20 = vpop.f32.mrb[11].mxu0  ;;  %v1048_v34 = vmul.f32 %v1639_v18, %v1639_v18  ;;  %v1968_v50 = vpop.f32.mrb[9].mxu1 }
  0xf1   :  { %v1108_v22 = vadd.f32 %v1107_v17, %v1045_v16  ;;  %v1422_v23 = vpack.c.bf16 %v428_v20, %v425_v14  ;;  %v976_v24 = vadd.f32 %v975_v15, %v428_v20  ;;  %v1046_v25 = vmul.f32 %v428_v20, %v428_v20  ;;  %v1970_v51 = vpop.f32.mrb[10].mxu1 }
  0xf2   :  { %1563 = vst [vmem:[#allocation2 + $0x28] sm:$0xff] %v1427_v19   ;;  %v1507_v55 = vpack.c.bf16 %v1970_v51, %v1966_v45  ;;  %v1974_v56 = vpop.f32.mrb[11].mxu1 }
  0xf3   :  { %1562 = vst [vmem:[#allocation2 + $0x20] sm:$0xff] %v1422_v23   ;;  %v977_v29 = vadd.f32 %v1638_v12, %v976_v24  ;;  %v1109_v30 = vadd.f32 %v1108_v22, %v1046_v25  ;;  %v1502_v57 = vpack.c.bf16 %v1974_v56, %v1968_v50 }
  0xf4   :  { %1579 = vst [vmem:[#allocation2 + $0xa8] sm:$0xff] %v1507_v55  }
  0xf5   :  { %v1110_v35 = vadd.f32 %v1109_v30, %v1047_v28  ;;  %v1642_v36 = vpop.f32.mrb[12].mxu0  ;;  %v978_v37 = vadd.f32 %v1639_v18, %v977_v29  ;;  %1578 = vst [vmem:[#allocation2 + $0xa0] sm:$0xff] %v1502_v57  }
  0xf6   :  { %v441_v38 = vpop.f32.mrb[13].mxu0  ;;  %v1051_v52 = vmul.f32 %v1642_v36, %v1642_v36 }
  0xf7   :  { %v979_v39 = vadd.f32 %v978_v37, %v441_v38  ;;  %v1049_v40 = vmul.f32 %v441_v38, %v441_v38  ;;  %v1111_v41 = vadd.f32 %v1110_v35, %v1048_v34  ;;  %v1643_v42 = vpop.f32.mrb[14].mxu0  ;;  %v1978_v9 = vpop.f32.mrb[12].mxu1 }
  0xf8   :  { %v1437_v43 = vpack.c.bf16 %v1643_v42, %v1642_v36  ;;  %v444_v44 = vpop.f32.mrb[15].mxu0  ;;  %v1052_v58 = vmul.f32 %v1643_v42, %v1643_v42  ;;  %v1980_v14 = vpop.f32.mrb[13].mxu1 }
  0xf9   :  { %v1112_v46 = vadd.f32 %v1111_v41, %v1049_v40  ;;  %v1432_v47 = vpack.c.bf16 %v444_v44, %v441_v38  ;;  %v980_v48 = vadd.f32 %v979_v39, %v444_v44  ;;  %v1050_v49 = vmul.f32 %v444_v44, %v444_v44  ;;  %v1982_v15 = vpop.f32.mrb[14].mxu1 }
  0xfa   :  { %1565 = vst [vmem:[#allocation2 + $0x38] sm:$0xff] %v1437_v43   ;;  %v1517_v19 = vpack.c.bf16 %v1982_v15, %v1978_v9  ;;  %v1986_v20 = vpop.f32.mrb[15].mxu1 }
  0xfb   :  { %1564 = vst [vmem:[#allocation2 + $0x30] sm:$0xff] %v1432_v47   ;;  %v981_v53 = vadd.f32 %v1642_v36, %v980_v48  ;;  %v1113_v54 = vadd.f32 %v1112_v46, %v1050_v49  ;;  %v1512_v22 = vpack.c.bf16 %v1986_v20, %v1980_v14 }
  0xfc   :  { %1581 = vst [vmem:[#allocation2 + $0xb8] sm:$0xff] %v1517_v19  }
  0xfd   :  { %v1114_v59 = vadd.f32 %v1113_v54, %v1051_v52  ;;  %v1646_v60 = vpop.f32.mrb[16].mxu0  ;;  %v982_v62 = vadd.f32 %v1643_v42, %v981_v53  ;;  %1580 = vst [vmem:[#allocation2 + $0xb0] sm:$0xff] %v1512_v22  }
  0xfe   :  { %v457_v63 = vpop.f32.mrb[17].mxu0  ;;  %v1055_v16 = vmul.f32 %v1646_v60, %v1646_v60 }
  0xff   :  { %v983_v0 = vadd.f32 %v982_v62, %v457_v63  ;;  %v1053_v1 = vmul.f32 %v457_v63, %v457_v63  ;;  %v1115_v4 = vadd.f32 %v1114_v59, %v1052_v58  ;;  %v1647_v5 = vpop.f32.mrb[18].mxu0  ;;  %v1990_v37 = vpop.f32.mrb[16].mxu1 }
 0x100   :  { %v1447_v6 = vpack.c.bf16 %v1647_v5, %v1646_v60  ;;  %v460_v7 = vpop.f32.mrb[19].mxu0  ;;  %v1056_v23 = vmul.f32 %v1647_v5, %v1647_v5  ;;  %v1992_v42 = vpop.f32.mrb[17].mxu1 }
 0x101   :  { %v1116_v10 = vadd.f32 %v1115_v4, %v1053_v1  ;;  %v1442_v11 = vpack.c.bf16 %v460_v7, %v457_v63  ;;  %v984_v12 = vadd.f32 %v983_v0, %v460_v7  ;;  %v1054_v13 = vmul.f32 %v460_v7, %v460_v7  ;;  %v1994_v43 = vpop.f32.mrb[18].mxu1 }
 0x102   :  { %1567 = vst [vmem:[#allocation2 + $0x48] sm:$0xff] %v1447_v6   ;;  %v1527_v48 = vpack.c.bf16 %v1994_v43, %v1990_v37  ;;  %v1998_v49 = vpop.f32.mrb[19].mxu1 }
 0x103   :  { %1566 = vst [vmem:[#allocation2 + $0x40] sm:$0xff] %v1442_v11   ;;  %v985_v17 = vadd.f32 %v1646_v60, %v984_v12  ;;  %v1117_v18 = vadd.f32 %v1116_v10, %v1054_v13  ;;  %v1522_v52 = vpack.c.bf16 %v1998_v49, %v1992_v42 }
 0x104   :  { %1583 = vst [vmem:[#allocation2 + $0xc8] sm:$0xff] %v1527_v48  }
 0x105   :  { %v1118_v24 = vadd.f32 %v1117_v18, %v1055_v16  ;;  %v1650_v25 = vpop.f32.mrb[20].mxu0  ;;  %v986_v28 = vadd.f32 %v1647_v5, %v985_v17  ;;  %1582 = vst [vmem:[#allocation2 + $0xc0] sm:$0xff] %v1522_v52  }
 0x106   :  { %v473_v29 = vpop.f32.mrb[21].mxu0  ;;  %v1059_v44 = vmul.f32 %v1650_v25, %v1650_v25 }
 0x107   :  { %v987_v30 = vadd.f32 %v986_v28, %v473_v29  ;;  %v1057_v31 = vmul.f32 %v473_v29, %v473_v29  ;;  %v1119_v33 = vadd.f32 %v1118_v24, %v1056_v23  ;;  %v1651_v34 = vpop.f32.mrb[22].mxu0  ;;  %v2002_v4 = vpop.f32.mrb[20].mxu1 }
 0x108   :  { %v1457_v35 = vpack.c.bf16 %v1651_v34, %v1650_v25  ;;  %v476_v36 = vpop.f32.mrb[23].mxu0  ;;  %v1060_v53 = vmul.f32 %v1651_v34, %v1651_v34  ;;  %v2004_v11 = vpop.f32.mrb[21].mxu1 }
 0x109   :  { %v1120_v38 = vadd.f32 %v1119_v33, %v1057_v31  ;;  %v1452_v39 = vpack.c.bf16 %v476_v36, %v473_v29  ;;  %v988_v40 = vadd.f32 %v987_v30, %v476_v36  ;;  %v1058_v41 = vmul.f32 %v476_v36, %v476_v36  ;;  %v2006_v12 = vpop.f32.mrb[22].mxu1 }
 0x10a   :  { %1569 = vst [vmem:[#allocation2 + $0x58] sm:$0xff] %v1457_v35   ;;  %v1537_v18 = vpack.c.bf16 %v2006_v12, %v2002_v4  ;;  %v2010_v19 = vpop.f32.mrb[23].mxu1 }
 0x10b   :  { %1568 = vst [vmem:[#allocation2 + $0x50] sm:$0xff] %v1452_v39   ;;  %v989_v46 = vadd.f32 %v1650_v25, %v988_v40  ;;  %v1121_v47 = vadd.f32 %v1120_v38, %v1058_v41  ;;  %v1532_v22 = vpack.c.bf16 %v2010_v19, %v2004_v11 }
 0x10c   :  { %1585 = vst [vmem:[#allocation2 + $0xd8] sm:$0xff] %v1537_v18  }
 0x10d   :  { %v1122_v54 = vadd.f32 %v1121_v47, %v1059_v44  ;;  %v1654_v55 = vpop.f32.mrb[24].mxu0  ;;  %v990_v57 = vadd.f32 %v1651_v34, %v989_v46  ;;  %1584 = vst [vmem:[#allocation2 + $0xd0] sm:$0xff] %v1532_v22  }
 0x10e   :  { %v489_v58 = vpop.f32.mrb[25].mxu0  ;;  %v1063_v13 = vmul.f32 %v1654_v55, %v1654_v55 }
 0x10f   :  { %v991_v59 = vadd.f32 %v990_v57, %v489_v58  ;;  %v1061_v60 = vmul.f32 %v489_v58, %v489_v58  ;;  %v1123_v62 = vadd.f32 %v1122_v54, %v1060_v53  ;;  %v1655_v63 = vpop.f32.mrb[26].mxu0  ;;  %v2014_v38 = vpop.f32.mrb[24].mxu1 }
 0x110   :  { %v1467_v0 = vpack.c.bf16 %v1655_v63, %v1654_v55  ;;  %v492_v1 = vpop.f32.mrb[27].mxu0  ;;  %v1064_v23 = vmul.f32 %v1655_v63, %v1655_v63  ;;  %v2016_v46 = vpop.f32.mrb[25].mxu1 }
 0x111   :  { %v1124_v5 = vadd.f32 %v1123_v62, %v1061_v60  ;;  %v1462_v6 = vpack.c.bf16 %v492_v1, %v489_v58  ;;  %v992_v7 = vadd.f32 %v991_v59, %v492_v1  ;;  %v1062_v10 = vmul.f32 %v492_v1, %v492_v1  ;;  %v2018_v47 = vpop.f32.mrb[26].mxu1 }
 0x112   :  { %1571 = vst [vmem:[#allocation2 + $0x68] sm:$0xff] %v1467_v0   ;;  %v1547_v54 = vpack.c.bf16 %v2018_v47, %v2014_v38  ;;  %v1069_v62 = vmul.f32 %v1944_v2, %v1944_v2 }
 0x113   :  { %1570 = vst [vmem:[#allocation2 + $0x60] sm:$0xff] %v1462_v6   ;;  %v993_v16 = vadd.f32 %v1654_v55, %v992_v7  ;;  %v1125_v17 = vadd.f32 %v1124_v5, %v1062_v10  ;;  %v2022_v55 = vpop.f32.mrb[27].mxu1  ;;  %v1070_v7 = vmul.f32 %v1950_v8, %v1950_v8 }
 0x114   :  { %v1542_v57 = vpack.c.bf16 %v2022_v55, %v2016_v46  ;;  %1587 = vst [vmem:[#allocation2 + $0xe8] sm:$0xff] %v1547_v54  }
 0x115   :  { %v1126_v24 = vadd.f32 %v1125_v17, %v1063_v13  ;;  %v1658_v25 = vpop.f32.mrb[28].mxu0  ;;  %v994_v28 = vadd.f32 %v1655_v63, %v993_v16  ;;  %v1071_v16 = vmul.f32 %v1942_v61, %v1942_v61 }
 0x116   :  { %v505_v29 = vpop.f32.mrb[29].mxu0  ;;  %v1067_v48 = vmul.f32 %v1658_v25, %v1658_v25  ;;  %1586 = vst [vmem:[#allocation2 + $0xe0] sm:$0xff] %v1542_v57  }
 0x117   :  { %v995_v30 = vadd.f32 %v994_v28, %v505_v29  ;;  %v1065_v31 = vmul.f32 %v505_v29, %v505_v29  ;;  %v1127_v33 = vadd.f32 %v1126_v24, %v1064_v23  ;;  %v1659_v34 = vpop.f32.mrb[30].mxu0  ;;  %v2029_v1 = vpop.f32.mrb[28].mxu1  ;;  %v1072_v23 = vmul.f32 %v1946_v3, %v1946_v3 }
 0x118   :  { %v1477_v35 = vpack.c.bf16 %v1659_v34, %v1658_v25  ;;  %v508_v36 = vpop.f32.mrb[31].mxu0  ;;  %v1068_v58 = vmul.f32 %v1659_v34, %v1659_v34  ;;  %v2034_v10 = vpop.f32.mrb[29].mxu1  ;;  %v1073_v28 = vmul.f32 %v1956_v26, %v1956_v26 }
 0x119   :  { %v1128_v39 = vadd.f32 %v1127_v33, %v1065_v31  ;;  %v1472_v40 = vpack.c.bf16 %v508_v36, %v505_v29  ;;  %v996_v41 = vadd.f32 %v995_v30, %v508_v36  ;;  %v1066_v44 = vmul.f32 %v508_v36, %v508_v36  ;;  %v2036_v13 = vpop.f32.mrb[30].mxu1 }
 0x11a   :  { %1573 = vst [vmem:[#allocation2 + $0x78] sm:$0xff] %v1477_v35   ;;  %v1557_v18 = vpack.c.bf16 %v2036_v13, %v2029_v1  ;;  %v2043_v22 = vpop.f32.mrb[31].mxu1 }
 0x11b   :  { %1572 = vst [vmem:[#allocation2 + $0x70] sm:$0xff] %v1472_v40   ;;  %v997_v52 = vadd.f32 %v1658_v25, %v996_v41  ;;  %v1129_v53 = vadd.f32 %v1128_v39, %v1066_v44 }
 0x11c   :  { %1589 = vst [vmem:[#allocation2 + $0xf8] sm:$0xff] %v1557_v18  }
 0x11d   :  { %v1130_v59 = vadd.f32 %v1129_v53, %v1067_v48  ;;  %v998_v60 = vadd.f32 %v1659_v34, %v997_v52 }
 0x11f   :  { %v999_v63 = vadd.f32 %v998_v60, %v1944_v2  ;;  %v1131_v0 = vadd.f32 %v1130_v59, %v1068_v58 }
 0x121   :  { %v1132_v5 = vadd.f32 %v1131_v0, %v1069_v62  ;;  %v1000_v6 = vadd.f32 %v999_v63, %v1950_v8  ;;  %v1552_v8 = vpack.c.bf16 %v2043_v22, %v2034_v10 }
 0x123   :  { %v1001_v2 = vadd.f32 %v1942_v61, %v1000_v6  ;;  %v1133_v17 = vadd.f32 %v1132_v5, %v1070_v7  ;;  %1588 = vst [vmem:[#allocation2 + $0xf0] sm:$0xff] %v1552_v8  }
 0x125   :  { %v1134_v24 = vadd.f32 %v1133_v17, %v1071_v16  ;;  %v1002_v25 = vadd.f32 %v1946_v3, %v1001_v2 }
 0x127   :  { %v1003_v61 = vadd.f32 %v1002_v25, %v1956_v26  ;;  %v1135_v29 = vadd.f32 %v1134_v24, %v1072_v23 }
 0x128   :  { %1746 = shalt.err (!%p1743_p4)
}
 0x129   :  { %s1747_s27 = scalar_lea.hbm %s2160_s2, 4096 }
 0x12a   :  { %p1748_p5 = scmp.ne.s32.totalorder %s2160_s2, %s1747_s27  ;;  %p1751_p6 = scmp.lt.u32.totalorder %s1747_s27, %s2160_s2 }
 0x12c   :  { %p1753_p7 = pnand %p1751_p6, %p1748_p5 }
 0x12e   :  { %1756 = shalt.err (!%p1753_p7)
}
 0x12f   :  { %s1785_s5 = smov 64   ;;  %s1786_s6 = smov 4   ;;  %v1136_v3 = vadd.f32 %v1135_v29, %v1073_v28  ;;  %v1004_v26 = vadd.f32 %v1003_v61, %v1962_v32  ;;  %v1074_v30 = vmul.f32 %v1962_v32, %v1962_v32  ;;  %v1075_v31 = vmul.f32 %v1954_v21, %v1954_v21 }
 0x130   :  { %1186 = dma.vmem_to_hbm [thread:$0]  %s1181_s23, 4096, %s2160_s2, [#allocation3], %s1785_s5, %s1785_s5, %s1786_s6   ;;  %v1076_v35 = vmul.f32 %v1958_v27, %v1958_v27  ;;  %v1077_v40 = vmul.f32 %v1968_v50, %v1968_v50  ;;  %v1078_v52 = vmul.f32 %v1974_v56, %v1974_v56  ;;  %v1082_v63 = vmul.f32 %v1986_v20, %v1986_v20 }
 0x131   :  { %v1005_v33 = vadd.f32 %v1954_v21, %v1004_v26  ;;  %v1137_v34 = vadd.f32 %v1136_v3, %v1074_v30  ;;  %v1079_v21 = vmul.f32 %v1966_v45, %v1966_v45  ;;  %v1086_v18 = vmul.f32 %v1998_v49, %v1998_v49  ;;  %s1787_s2 = smov [#allocation4]  }
 0x132   :  { %v1090_v3 = vmul.f32 %v2010_v19, %v2010_v19  ;;  %vm1170_vm3 = vcmask 1040384   ;;  %s1193_s9 = sshll.u32 %s1787_s2, 4  ;;  %vm1172_vm4 = vcmask 1041408   ;;  %s1194_s9 = int_to_ptr.vmem [resolvable:$true] %s1193_s9 }
 0x133   :  { %v1138_v36 = vadd.f32 %v1137_v34, %v1075_v31  ;;  %v1006_v39 = vadd.f32 %v1958_v27, %v1005_v33  ;;  %v1080_v27 = vmul.f32 %v1970_v51, %v1970_v51  ;;  %s1757_s10 = scalar_lea.vmem %s1194_s9, 128  ;;  %p1762_p9 = scmp.lt.s32.totalorder %s1194_s9, %s1194_s9 }
 0x134   :  { %p1758_p8 = scmp.ne.s32.totalorder %s1194_s9, %s1757_s10  ;;  %p1763_p10 = scmp.lt.s32.totalorder %s1757_s10, %s1757_s10 }
 0x135   :  { %v1007_v41 = vadd.f32 %v1006_v39, %v1968_v50  ;;  %v1139_v44 = vadd.f32 %v1138_v36, %v1076_v35  ;;  %v1081_v50 = vmul.f32 %v1980_v14, %v1980_v14  ;;  %v1094_v39 = vmul.f32 %v2022_v55, %v2022_v55 }
 0x136   :  { %p1764_p11 = por %p1763_p10, %p1762_p9 }
 0x137   :  { %v1140_v48 = vadd.f32 %v1139_v44, %v1077_v40  ;;  %v1008_v32 = vadd.f32 %v1007_v41, %v1974_v56 }
 0x138   :  { %p1765_p12 = pnand %p1764_p11, %p1758_p8 }
 0x139   :  { %v1009_v53 = vadd.f32 %v1966_v45, %v1008_v32  ;;  %v1141_v54 = vadd.f32 %v1140_v48, %v1078_v52  ;;  %v1083_v45 = vmul.f32 %v1978_v9, %v1978_v9 }
 0x13b   :  { %v1142_v57 = vadd.f32 %v1141_v54, %v1079_v21  ;;  %v1010_v58 = vadd.f32 %v1970_v51, %v1009_v53  ;;  %v1084_v51 = vmul.f32 %v1982_v15, %v1982_v15  ;;  %v1098_v53 = vmul.f32 %v2043_v22, %v2043_v22 }
 0x13d   :  { %v1011_v59 = vadd.f32 %v1010_v58, %v1980_v14  ;;  %v1143_v60 = vadd.f32 %v1142_v57, %v1080_v27  ;;  %v1085_v14 = vmul.f32 %v1992_v42, %v1992_v42 }
 0x13f   :  { %v1144_v62 = vadd.f32 %v1143_v60, %v1081_v50  ;;  %v1012_v56 = vadd.f32 %v1011_v59, %v1986_v20 }
 0x141   :  { %v1013_v0 = vadd.f32 %v1978_v9, %v1012_v56  ;;  %v1145_v5 = vadd.f32 %v1144_v62, %v1082_v63  ;;  %v1087_v9 = vmul.f32 %v1990_v37, %v1990_v37 }
 0x143   :  { %v1146_v6 = vadd.f32 %v1145_v5, %v1083_v45  ;;  %v1014_v7 = vadd.f32 %v1982_v15, %v1013_v0  ;;  %v1088_v15 = vmul.f32 %v1994_v43, %v1994_v43 }
 0x145   :  { %v1015_v16 = vadd.f32 %v1014_v7, %v1992_v42  ;;  %v1147_v2 = vadd.f32 %v1146_v6, %v1084_v51  ;;  %v1089_v42 = vmul.f32 %v2004_v11, %v2004_v11 }
 0x147   :  { %v1148_v17 = vadd.f32 %v1147_v2, %v1085_v14  ;;  %v1016_v20 = vadd.f32 %v1015_v16, %v1998_v49 }
 0x149   :  { %v1017_v8 = vadd.f32 %v1990_v37, %v1016_v20  ;;  %v1149_v23 = vadd.f32 %v1148_v17, %v1086_v18  ;;  %v1091_v37 = vmul.f32 %v2002_v4, %v2002_v4 }
 0x14b   :  { %v1150_v24 = vadd.f32 %v1149_v23, %v1087_v9  ;;  %v1018_v25 = vadd.f32 %v1994_v43, %v1017_v8  ;;  %v1092_v43 = vmul.f32 %v2006_v12, %v2006_v12 }
 0x14d   :  { %v1019_v28 = vadd.f32 %v1018_v25, %v2004_v11  ;;  %v1151_v61 = vadd.f32 %v1150_v24, %v1088_v15  ;;  %v1093_v11 = vmul.f32 %v2016_v46, %v2016_v46 }
 0x14f   :  { %v1152_v29 = vadd.f32 %v1151_v61, %v1089_v42  ;;  %v1020_v49 = vadd.f32 %v1019_v28, %v2010_v19 }
 0x151   :  { %v1021_v26 = vadd.f32 %v2002_v4, %v1020_v49  ;;  %v1153_v30 = vadd.f32 %v1152_v29, %v1090_v3  ;;  %v1095_v4 = vmul.f32 %v2014_v38, %v2014_v38 }
 0x153   :  { %v1154_v31 = vadd.f32 %v1153_v30, %v1091_v37  ;;  %v1022_v33 = vadd.f32 %v2006_v12, %v1021_v26  ;;  %v1096_v12 = vmul.f32 %v2018_v47, %v2018_v47 }
 0x155   :  { %v1023_v34 = vadd.f32 %v1022_v33, %v2016_v46  ;;  %v1155_v35 = vadd.f32 %v1154_v31, %v1092_v43  ;;  %v1097_v46 = vmul.f32 %v2034_v10, %v2034_v10 }
 0x157   :  { %v1156_v36 = vadd.f32 %v1155_v35, %v1093_v11  ;;  %v1024_v19 = vadd.f32 %v1023_v34, %v2022_v55 }
 0x159   :  { %v1025_v40 = vadd.f32 %v2014_v38, %v1024_v19  ;;  %v1157_v41 = vadd.f32 %v1156_v36, %v1094_v39  ;;  %v1099_v38 = vmul.f32 %v2029_v1, %v2029_v1 }
 0x15b   :  { %v1158_v44 = vadd.f32 %v1157_v41, %v1095_v4  ;;  %v1026_v48 = vadd.f32 %v2018_v47, %v1025_v40  ;;  %v1100_v47 = vmul.f32 %v2036_v13, %v2036_v13 }
 0x15d   :  { %v1027_v32 = vadd.f32 %v1026_v48, %v2034_v10  ;;  %v1159_v52 = vadd.f32 %v1158_v44, %v1096_v12 }
 0x15f   :  { %v1160_v21 = vadd.f32 %v1159_v52, %v1097_v46  ;;  %v1028_v55 = vadd.f32 %v1027_v32, %v2043_v22 }
 0x161   :  { %v1029_v54 = vadd.f32 %v2029_v1, %v1028_v55  ;;  %v1161_v27 = vadd.f32 %v1160_v21, %v1098_v53 }
 0x163   :  { %v1030_v57 = vadd.f32 %v2036_v13, %v1029_v54  ;;  %v1162_v58 = vadd.f32 %v1161_v27, %v1099_v38 }
 0x165   :  { %v1031_v10 = vrot.slane %v1030_v57, 4  ;;  %v1163_v50 = vadd.f32 %v1162_v58, %v1100_v47 }
 0x167   :  { %v1032_v59 = vadd.f32 %v1031_v10, %v1030_v57  ;;  %v1164_v60 = vrot.slane %v1163_v50, 4 }
 0x169   :  { %v1033_v62 = vrot.slane %v1032_v59, 2  ;;  %v1165_v56 = vadd.f32 %v1164_v60, %v1163_v50 }
 0x16b   :  { %v1034_v63 = vadd.f32 %v1033_v62, %v1032_v59  ;;  %v1166_v22 = vrot.slane %v1165_v56, 2 }
 0x16d   :  { %v1035_v45 = vrot.slane %v1034_v63, 1  ;;  %v1167_v0 = vadd.f32 %v1166_v22, %v1165_v56 }
 0x16f   :  { %v1168_v5 = vrot.slane %v1167_v0, 1  ;;  %v1036_v1 = vadd.f32 %v1035_v45, %v1034_v63 }
 0x171   :  { %v1169_v51 = vadd.f32 %v1168_v5, %v1167_v0 }
 0x173   :  { %v1171_v6 = vsel %vm1170_vm3, %v1036_v1, %v1169_v51 }
 0x174   :  { %v1173_v13 = vsel %vm1172_vm4, %v1171_v6, 0.0 }
 0x175   :  { %1174 = vst [vmem:[#allocation4] sm:$0xff] %v1173_v13 }
 0x176   :  { %1768 = shalt.err (!%p1765_p12)
}
 0x177   :  { %s1769_s13 = scalar_lea.hbm %s2161_s3, 128 }
 0x178   :  { %p1770_p13 = scmp.ne.s32.totalorder %s2161_s3, %s1769_s13  ;;  %p1773_p0 = scmp.lt.u32.totalorder %s1769_s13, %s2161_s3 }
 0x17a   :  { %p1775_p1 = pnand %p1773_p0, %p1770_p13 }
 0x17c   :  { %1778 = shalt.err (!%p1775_p1)
}
 0x17d   :  { %1196 = dma.vmem_to_hbm [thread:$0]  %s1194_s9, 128, %s2161_s3, [#allocation5]  }
 0x17e   :  { %1779 = dma.done.wait [#allocation3], 4096  }
 0x17f   :  { %1780 = vsyncadd [#allocation3], 4294963200 }
 0x180   :  { %1781 = dma.done.wait [#allocation5], 128  }
 0x181   :  { %1782 = vsyncadd [#allocation5], 4294967168 }
 0x182   :  { %1203 = vsyncpa [#allocation3], 1 }
 0x183   :  { %1204 = vsyncpa [#allocation5], 1 }

</bundles_post_ra>
